<compile_context>
chip_gen: v5e
topology: v5e:2x2
jax: 0.10.0
libtpu: 0.0.40
codegen_flags: <defaults>
</compile_context>

<pallas_src>
import jax
import jax.numpy as jnp
from jax.experimental import pallas as pl
from jax.experimental.pallas import tpu as pltpu

_LANE = 128
_SUBLANE = 8


def _round_up(x, m):
    return (x + m - 1) // m * m


def _default_batch_tile(batch):
    # Tiny batches: one full-batch step (rounded up to a sublane multiple).
    if batch < 16:
        return _round_up(max(batch, 1), _SUBLANE)
    # Target ~512-1024 rows/step for pipelining, but always leave >= 2 grid
    # steps so both v7x TensorCores get work ("parallel" batch axis).
    return min(1024, _round_up(pl.cdiv(batch, 2), _SUBLANE))


def _q_mlp_kernel(x_ref, w1_ref, b1_ref, w2_ref, b2_ref, w3_ref, b3_ref, o_ref):
    x = x_ref[...]
    # layer 1: Linear + ReLU (hidden_activation = relu)
    h = jnp.dot(x, w1_ref[...], preferred_element_type=jnp.float32)
    h = jnp.maximum(h + b1_ref[...], 0.0).astype(x.dtype)
    # layer 2: Linear + ReLU
    h = jnp.dot(h, w2_ref[...], preferred_element_type=jnp.float32)
    h = jnp.maximum(h + b2_ref[...], 0.0).astype(x.dtype)
    # layer 3: Linear + Identity (output columns >= act_num are zero padding)
    o = jnp.dot(h, w3_ref[...], preferred_element_type=jnp.float32) + b3_ref[...]
    o_ref[...] = o.astype(o_ref.dtype)


def action_value_dis_forward(obs, params, *, batch_tile=None, compute_dtype=None,
                             min_pallas_batch=0):
    """Q(obs) -> (B, act_num). params hold pre-transposed (in, out) weights."""
    w1, b1 = params["w1"], params["b1"]
    w2, b2 = params["w2"], params["b2"]
    w3, b3 = params["w3"], params["b3"]

    B, obs_dim = obs.shape
    h1 = w1.shape[1]
    h2 = w2.shape[1]
    act_num = w3.shape[1]

    if B < min_pallas_batch:
        # Tiny batches: kernel-launch + pipeline-prologue overhead dwarfs the
        # compute; a plain XLA fusion of three dots is at least as fast.
        h = jnp.maximum(obs @ w1 + b1, 0.0)
        h = jnp.maximum(h @ w2 + b2, 0.0)
        return h @ w3 + b3

    if compute_dtype is not None:  # e.g. jnp.bfloat16 to halve obs HBM traffic
        obs = obs.astype(compute_dtype)
        w1, b1, w2, b2, w3, b3 = (
            t.astype(compute_dtype) for t in (w1, b1, w2, b2, w3, b3)
        )

    # --- batch tiling: pipelining + v7x megacore + VMEM safety -------------
    if batch_tile is None:
        batch_tile = _default_batch_tile(B)
    batch_tile = max(_SUBLANE, _round_up(batch_tile, _SUBLANE))
    b_pad = _round_up(B, batch_tile)
    if b_pad != B:
        obs = jnp.pad(obs, ((0, b_pad - B), (0, 0)))

    # --- lane-dense output: pad final layer to a multiple of 128 columns ---
    out_pad = _round_up(act_num, _LANE)
    if out_pad != act_num:
        w3 = jnp.pad(w3, ((0, 0), (0, out_pad - act_num)))
        b3 = jnp.pad(b3, ((0, 0), (0, out_pad - act_num)))

    grid = (b_pad // batch_tile,)
    # Weights/biases are small and use the same (0, 0) block every step.
    const = lambda shape: pl.BlockSpec(shape, lambda i: (0, 0))

    out = pl.pallas_call(
        _q_mlp_kernel,
        out_shape=jax.ShapeDtypeStruct((b_pad, out_pad), obs.dtype),
        grid_spec=pltpu.PrefetchScalarGridSpec(
            num_scalar_prefetch=0,
            grid=grid,
            in_specs=[
                pl.BlockSpec((batch_tile, obs_dim), lambda i: (i, 0)),
                const((obs_dim, h1)),
                const((1, h1)),
                const((h1, h2)),
                const((1, h2)),
                const((h2, out_pad)),
                const((1, out_pad)),
            ],
            out_specs=pl.BlockSpec((batch_tile, out_pad), lambda i: (i, 0)),
        ),
        compiler_params=pltpu.CompilerParams(
            dimension_semantics=("parallel",),
        ),
    )(obs, w1, b1, w2, b2, w3, b3)

    return out[:B, :act_num]


def init_params(key, obs_dim, hidden_sizes, act_num):
    """nn.Linear-style init U(-1/sqrt(fan_in), 1/sqrt(fan_in)); weights stored
    transposed as (in_dim, out_dim)."""
    sizes = [obs_dim] + list(hidden_sizes) + [act_num]
    params = {}
    for j in range(len(sizes) - 1):
        fan_in, fan_out = sizes[j], sizes[j + 1]
        key, kw, kb = jax.random.split(key, 3)
        bound = 1.0 / jnp.sqrt(jnp.float32(fan_in))
        params[f"w{j + 1}"] = jax.random.uniform(
            kw, (fan_in, fan_out), jnp.float32, -bound, bound
        )
        params[f"b{j + 1}"] = jax.random.uniform(
            kb, (1, fan_out), jnp.float32, -bound, bound
        )
    return params


def reference_forward(obs, params):
    h = jnp.maximum(obs @ params["w1"] + params["b1"], 0.0)
    h = jnp.maximum(h @ params["w2"] + params["b2"], 0.0)
    return h @ params["w3"] + params["b3"]


if __name__ == "__main__":
    # Shapes consistent with the module: obs_dim=32, hidden_sizes=(32, 32), act_num=8.
    obs_dim, hidden_sizes, act_num = 32, (32, 32), 8

    key = jax.random.PRNGKey(0)
    key, kobs_s, kobs_l = jax.random.split(key, 3)
    params = init_params(key, obs_dim, hidden_sizes, act_num)

    # Small batch (grid collapses to one step) — the canonical module-sized test.
    obs_small = jax.random.normal(kobs_s, (8, obs_dim), jnp.float32)
    q_small = jax.block_until_ready(action_value_dis_forward(obs_small, params))
    assert q_small.shape == (8, act_num)
    assert jnp.allclose(q_small, reference_forward(obs_small, params),
                        atol=1e-5, rtol=1e-5)

    # Larger, non-tile-aligned batch: exercises batch zero-padding, the
    # multi-step pipelined grid, and the lane-dense padded output path.
    obs_large = jax.random.normal(kobs_l, (1000, obs_dim), jnp.float32)
    q_large = jax.block_until_ready(action_value_dis_forward(obs_large, params))
    assert q_large.shape == (1000, act_num)
    assert jnp.allclose(q_large, reference_forward(obs_large, params),
                        atol=1e-4, rtol=1e-4)

    print("KERNEL_OK")
</pallas_src>

<mosaic_0001>
module attributes {stable_mosaic.version = 11 : i64} {
  func.func @_q_mlp_kernel(%arg0: i32, %arg1: memref<8x32xf32, #tpu.memory_space<vmem>>, %arg2: memref<32x32xf32, #tpu.memory_space<vmem>>, %arg3: memref<1x32xf32, #tpu.memory_space<vmem>>, %arg4: memref<32x32xf32, #tpu.memory_space<vmem>>, %arg5: memref<1x32xf32, #tpu.memory_space<vmem>>, %arg6: memref<32x128xf32, #tpu.memory_space<vmem>>, %arg7: memref<1x128xf32, #tpu.memory_space<vmem>>, %arg8: memref<8x128xf32, #tpu.memory_space<vmem>>) attributes {dimension_semantics = [#tpu.dimension_semantics<parallel>], iteration_bounds = array<i64: 1>, scalar_prefetch = 0 : i64, scratch_operands = 0 : i64, tpu.core_type = #tpu.core_type<tc>, window_params = [{transform_indices = @transform_0, window_bounds = array<i64: 8, 32>}, {pipeline_mode = #tpu.pipeline_mode<synchronous>, transform_indices = @transform_1, window_bounds = array<i64: 32, 32>}, {pipeline_mode = #tpu.pipeline_mode<synchronous>, transform_indices = @transform_2, window_bounds = array<i64: 1, 32>}, {pipeline_mode = #tpu.pipeline_mode<synchronous>, transform_indices = @transform_3, window_bounds = array<i64: 32, 32>}, {pipeline_mode = #tpu.pipeline_mode<synchronous>, transform_indices = @transform_4, window_bounds = array<i64: 1, 32>}, {pipeline_mode = #tpu.pipeline_mode<synchronous>, transform_indices = @transform_5, window_bounds = array<i64: 32, 128>}, {pipeline_mode = #tpu.pipeline_mode<synchronous>, transform_indices = @transform_6, window_bounds = array<i64: 1, 128>}, {transform_indices = @transform_7, window_bounds = array<i64: 8, 128>}]} {
    %c0 = arith.constant 0 : index
    %c0_0 = arith.constant 0 : index
    %0 = vector.load %arg1[%c0, %c0_0] : memref<8x32xf32, #tpu.memory_space<vmem>>, vector<8x32xf32>
    %c0_1 = arith.constant 0 : index
    %c0_2 = arith.constant 0 : index
    %1 = vector.load %arg2[%c0_1, %c0_2] : memref<32x32xf32, #tpu.memory_space<vmem>>, vector<32x32xf32>
    %cst = arith.constant dense<0.000000e+00> : vector<8x32xf32>
    %2 = tpu.matmul %0, %1, %cst {dimension_numbers = #tpu.dot_dimension_numbers<[1], [0], [0], [1], [0, 0, 1, 1], [], []>} : vector<8x32xf32>, vector<32x32xf32>, vector<8x32xf32> -> vector<8x32xf32>
    %c0_3 = arith.constant 0 : index
    %c0_4 = arith.constant 0 : index
    %3 = vector.load %arg3[%c0_3, %c0_4] : memref<1x32xf32, #tpu.memory_space<vmem>>, vector<1x32xf32>
    %4 = vector.broadcast %3 : vector<1x32xf32> to vector<8x32xf32>
    %5 = arith.addf %2, %4 : vector<8x32xf32>
    %cst_5 = arith.constant 0.000000e+00 : f32
    %6 = vector.broadcast %cst_5 : f32 to vector<8x32xf32>
    %7 = arith.maximumf %5, %6 : vector<8x32xf32>
    %c0_6 = arith.constant 0 : index
    %c0_7 = arith.constant 0 : index
    %8 = vector.load %arg4[%c0_6, %c0_7] : memref<32x32xf32, #tpu.memory_space<vmem>>, vector<32x32xf32>
    %cst_8 = arith.constant dense<0.000000e+00> : vector<8x32xf32>
    %9 = tpu.matmul %7, %8, %cst_8 {dimension_numbers = #tpu.dot_dimension_numbers<[1], [0], [0], [1], [0, 0, 1, 1], [], []>} : vector<8x32xf32>, vector<32x32xf32>, vector<8x32xf32> -> vector<8x32xf32>
    %c0_9 = arith.constant 0 : index
    %c0_10 = arith.constant 0 : index
    %10 = vector.load %arg5[%c0_9, %c0_10] : memref<1x32xf32, #tpu.memory_space<vmem>>, vector<1x32xf32>
    %11 = vector.broadcast %10 : vector<1x32xf32> to vector<8x32xf32>
    %12 = arith.addf %9, %11 : vector<8x32xf32>
    %cst_11 = arith.constant 0.000000e+00 : f32
    %13 = vector.broadcast %cst_11 : f32 to vector<8x32xf32>
    %14 = arith.maximumf %12, %13 : vector<8x32xf32>
    %c0_12 = arith.constant 0 : index
    %c0_13 = arith.constant 0 : index
    %15 = vector.load %arg6[%c0_12, %c0_13] : memref<32x128xf32, #tpu.memory_space<vmem>>, vector<32x128xf32>
    %cst_14 = arith.constant dense<0.000000e+00> : vector<8x128xf32>
    %16 = tpu.matmul %14, %15, %cst_14 {dimension_numbers = #tpu.dot_dimension_numbers<[1], [0], [0], [1], [0, 0, 1, 1], [], []>} : vector<8x32xf32>, vector<32x128xf32>, vector<8x128xf32> -> vector<8x128xf32>
    %c0_15 = arith.constant 0 : index
    %c0_16 = arith.constant 0 : index
    %17 = vector.load %arg7[%c0_15, %c0_16] : memref<1x128xf32, #tpu.memory_space<vmem>>, vector<1x128xf32>
    %18 = vector.broadcast %17 : vector<1x128xf32> to vector<8x128xf32>
    %19 = arith.addf %16, %18 : vector<8x128xf32>
    %c0_17 = arith.constant 0 : index
    %c0_18 = arith.constant 0 : index
    %20 = vector.load %arg8[%c0_17, %c0_18] : memref<8x128xf32, #tpu.memory_space<vmem>>, vector<8x128xf32>
    tpu.vector_store %arg8[%c0_17, %c0_18], %19 {strides = array<i32>} : memref<8x128xf32, #tpu.memory_space<vmem>>, vector<8x128xf32>,
    return
  }
  func.func @transform_0(%arg0: i32) -> (i32, i32) {
    %c0_i32 = arith.constant 0 : i32
    %c0_i32_0 = arith.constant 0 : i32
    return %arg0, %c0_i32 : i32, i32
  }
  func.func @transform_1(%arg0: i32) -> (i32, i32) {
    %c0_i32 = arith.constant 0 : i32
    %c0_i32_0 = arith.constant 0 : i32
    %c0_i32_1 = arith.constant 0 : i32
    return %c0_i32, %c0_i32_0 : i32, i32
  }
  func.func @transform_2(%arg0: i32) -> (i32, i32) {
    %c0_i32 = arith.constant 0 : i32
    %c0_i32_0 = arith.constant 0 : i32
    %c0_i32_1 = arith.constant 0 : i32
    return %c0_i32, %c0_i32_0 : i32, i32
  }
  func.func @transform_3(%arg0: i32) -> (i32, i32) {
    %c0_i32 = arith.constant 0 : i32
    %c0_i32_0 = arith.constant 0 : i32
    %c0_i32_1 = arith.constant 0 : i32
    return %c0_i32, %c0_i32_0 : i32, i32
  }
  func.func @transform_4(%arg0: i32) -> (i32, i32) {
    %c0_i32 = arith.constant 0 : i32
    %c0_i32_0 = arith.constant 0 : i32
    %c0_i32_1 = arith.constant 0 : i32
    return %c0_i32, %c0_i32_0 : i32, i32
  }
  func.func @transform_5(%arg0: i32) -> (i32, i32) {
    %c0_i32 = arith.constant 0 : i32
    %c0_i32_0 = arith.constant 0 : i32
    %c0_i32_1 = arith.constant 0 : i32
    return %c0_i32, %c0_i32_0 : i32, i32
  }
  func.func @transform_6(%arg0: i32) -> (i32, i32) {
    %c0_i32 = arith.constant 0 : i32
    %c0_i32_0 = arith.constant 0 : i32
    %c0_i32_1 = arith.constant 0 : i32
    return %c0_i32, %c0_i32_0 : i32, i32
  }
  func.func @transform_7(%arg0: i32) -> (i32, i32) {
    %c0_i32 = arith.constant 0 : i32
    %c0_i32_0 = arith.constant 0 : i32
    return %arg0, %c0_i32 : i32, i32
  }
}

</mosaic_0001>

<bundles_post_ra>
// kernel: tpu_custom_call.1
= control target key start
LH: loop header
LB: loop body
LE: loop exit
PB: predicated region body
PF: predicated region fallthrough
CT: control target
= control target key end

     0   :  { %12 = vsyncpa [#allocation3], 0  ;;  %s420_s0 = inlined_call_operand.hbm [shape: f32[8,32], index: 0, kind: input, shape index: {}]   ;;  %s421_s1 = inlined_call_operand.hbm [shape: f32[32,32], index: 1, kind: input, shape index: {}]   ;;  %s422_s2 = inlined_call_operand.vmem [shape: f32[1,32], index: 2, kind: input, shape index: {}]   ;;  %s423_s3 = inlined_call_operand.hbm [shape: f32[32,32], index: 3, kind: input, shape index: {}]   ;;  %s424_s4 = inlined_call_operand.vmem [shape: f32[1,32], index: 4, kind: input, shape index: {}]   ;;  %s425_s5 = inlined_call_operand.hbm [shape: f32[32,128], index: 5, kind: input, shape index: {}]   ;;  %s426_s6 = inlined_call_operand.vmem [shape: f32[1,128], index: 6, kind: input, shape index: {}]   ;;  %s427_s7 = inlined_call_operand.hbm [shape: f32[8,128], index: 7, kind: output, shape index: {}]  }
   0x1   :  { %13 = vsyncpa [#allocation6], 0 }
   0x2   :  { %14 = vsyncpa [#allocation9], 0  ;;  %s31_s26 = sshll.u32 %s421_s1, 4  ;;  %s32_s26 = int_to_ptr.hbm [resolvable:$true] %s31_s26 }
   0x3   :  { %15 = vsyncpa [#allocation4], 0  ;;  %s346_s27 = smov [#allocation5]   ;;  %s21_s8 = sshll.u32 %s420_s0, 4  ;;  %s22_s8 = int_to_ptr.hbm [resolvable:$true] %s21_s8 }
   0x4   :  { %s33_s28 = sshll.u32 %s346_s27, 4  ;;  %s347_s9 = smov 128   ;;  %s34_s28 = int_to_ptr.vmem [resolvable:$true] %s33_s28 }
   0x5   :  { %s348_s10 = smov 8   ;;  %s349_s11 = smov [#allocation2]  }
   0x6   :  { %39 = dma.hbm_to_vmem [thread:$0]  %s32_s26, 512, %s34_s28, [#allocation6], %s347_s9, %s347_s9, %s348_s10  }
   0x7   :  { %s23_s12 = sshll.u32 %s349_s11, 4  ;;  %s46_s15 = sshll.u32 %s423_s3, 4  ;;  %s24_s12 = int_to_ptr.vmem [resolvable:$true] %s23_s12  ;;  %s47_s15 = int_to_ptr.hbm [resolvable:$true] %s46_s15 }
   0x8   :  { %26 = dma.hbm_to_vmem [thread:$0]  %s22_s8, 128, %s24_s12, [#allocation3]  }
   0x9   :  { %s61_s17 = sshll.u32 %s425_s5, 4  ;;  %s350_s18 = smov [#allocation7]   ;;  %s62_s17 = int_to_ptr.hbm [resolvable:$true] %s61_s17 }
   0xa   :  { %s48_s19 = sshll.u32 %s350_s18, 4  ;;  %s351_s0 = smov [#allocation8]   ;;  %s49_s19 = int_to_ptr.vmem [resolvable:$true] %s48_s19 }
   0xb   :  { %54 = dma.hbm_to_vmem [thread:$0]  %s47_s15, 512, %s49_s19, [#allocation6], %s347_s9, %s347_s9, %s348_s10  }
   0xc   :  { %s63_s20 = sshll.u32 %s351_s0, 4  ;;  %s64_s20 = int_to_ptr.vmem [resolvable:$true] %s63_s20 }
   0xd   :  { %69 = dma.hbm_to_vmem [thread:$0]  %s62_s17, 512, %s64_s20, [#allocation9], %s347_s9, %s347_s9, %s348_s10  }
   0xe   :  { %338 = dma.done.wait [#allocation3], 128  }
   0xf   :  { %339 = vsyncadd [#allocation3], 4294967168 }
  0x10   :  { %340 = dma.done.wait [#allocation6], 1024  }
  0x11   :  { %341 = vsyncadd [#allocation6], 4294966272 }
  0x12   :  { %342 = dma.done.wait [#allocation9], 512  }
  0x13   :  { %343 = vsyncadd [#allocation9], 4294966784  ;;  %v92_v0 = vld [vmem:[#allocation5 + $0x18] sm:$0xff]  ;;  %v91_v1 = vld [vmem:[#allocation5 + $0x10] sm:$0xff]  ;;  %vm97_vm0 = vcmask 261120   ;;  %s352_s24 = smov [#allocation10]  }
  0x14   :  { %113 = vmatpush.msra.mxu0 %v92_v0  ;;  %v125_v2 = vld [vmem:[#allocation7 + $0x18] sm:$0xff]  ;;  %v90_v3 = vld [vmem:[#allocation5 + $0x8] sm:$0xff]  ;;  %v89_v4 = vld [vmem:[#allocation5] sm:$0xff]  ;;  %s191_s25 = sshll.u32 %s352_s24, 4  ;;  %s193_s28 = sshll.u32 %s427_s7, 4  ;;  %s192_s25 = int_to_ptr.vmem [resolvable:$true] %s191_s25  ;;  %s194_s28 = int_to_ptr.hbm [resolvable:$true] %s193_s28 }
  0x15   :  { %145 = vmatpush.msra.mxu1 %v125_v2  ;;  %v88_v5 = vld [vmem:[#allocation2] sm:$0xff]  ;;  %v124_v6 = vld [vmem:[#allocation7 + $0x10] sm:$0xff]  ;;  %v123_v7 = vld [vmem:[#allocation7 + $0x8] sm:$0xff] }
  0x16   :  { %114 = vmatpush.msra.mxu0 %v91_v1  ;;  %v122_v8 = vld [vmem:[#allocation7] sm:$0xff]  ;;  %v157_v9 = vld [vmem:[#allocation8 + $0x18] sm:$0xff]  ;;  %v156_v14 = vld [vmem:[#allocation8 + $0x10] sm:$0xff] }
  0x17   :  { %146 = vmatpush.msra.mxu1 %v124_v6  ;;  %177 = vmatpush.msra.mxu2 %v157_v9  ;;  %v215_v10 = vld [vmem:[%s422_s2] ss:$0 sm:$0xff]  ;;  %v155_v15 = vld [vmem:[#allocation8 + $0x8] sm:$0xff]  ;;  %v154_v16 = vld [vmem:[#allocation8] sm:$0xff] }
  0x18   :  { %115 = vmatpush.msra.mxu0 %v90_v3  ;;  %v216_v17 = vld [vmem:[%s424_s4] ss:$0 sm:$0xff] }
  0x19   :  { %147 = vmatpush.msra.mxu1 %v123_v7  ;;  %178 = vmatpush.msra.mxu2 %v156_v14  ;;  %v217_v21 = vld [vmem:[%s426_s6] ss:$0 sm:$0xff] }
  0x1a   :  { %116 = vmatpush.msra.mxu0 %v89_v4 }
  0x1b   :  { %205 = vmatmul.msk.f32.vlgmr.msra.gmra.mxu0 %vm97_vm0, %v88_v5  ;;  %148 = vmatpush.msra.mxu1 %v122_v8 }
  0x1c   :  { %179 = vmatpush.msra.mxu2 %v155_v15 }
  0x1e   :  { %180 = vmatpush.msra.mxu2 %v154_v16 }
  0x98   :  { %v118_v11 = vpop.f32.mrf.mxu0 }
  0x99   :  { %v119_v12 = vadd.f32 %v215_v10, %v118_v11 }
  0x9b   :  { %v121_v13 = vmax.f32 %v119_v12, 0.0 }
  0x9d   :  { %206 = vmatmul.msk.f32.vlgmr.msra.gmra.mxu1 %vm97_vm0, %v121_v13 }
 0x11a   :  { %v150_v18 = vpop.f32.mrf.mxu1 }
 0x11b   :  { %v151_v19 = vadd.f32 %v216_v17, %v150_v18 }
 0x11d   :  { %v153_v20 = vmax.f32 %v151_v19, 0.0 }
 0x11f   :  { %207 = vmatmul.msk.f32.vlgmr.msra.gmra.mxu2 %vm97_vm0, %v153_v20 }
 0x1a2   :  { %v182_v22 = vpop.f32.mrf.mxu2 }
 0x1a3   :  { %v183_v23 = vadd.f32 %v217_v21, %v182_v22 }
 0x1a5   :  { %185 = vst [vmem:[#allocation10] sm:$0xff] %v183_v23 }
 0x1a6   :  { %196 = dma.vmem_to_hbm [thread:$0]  %s192_s25, 128, %s194_s28, [#allocation4]  }
 0x1a7   :  { %344 = dma.done.wait [#allocation4], 128  }
 0x1a8   :  { %345 = vsyncadd [#allocation4], 4294967168 }
 0x1a9   :  { %201 = vsyncpa [#allocation3], 1 }
 0x1aa   :  { %202 = vsyncpa [#allocation6], 1 }
 0x1ab   :  { %203 = vsyncpa [#allocation9], 1 }
 0x1ac   :  { %204 = vsyncpa [#allocation4], 1 }

</bundles_post_ra>
